<compile_context>
chip_gen: v6e
topology: v6e:2x2x1
jax: 0.10.0
libtpu: 0.0.40
codegen_flags: <defaults>
</compile_context>

<pallas_src>
import functools

import jax
import jax.numpy as jnp
from jax.experimental import pallas as pl
from jax.experimental.pallas import tpu as pltpu


def _stroke_focus_kernel(sr_ref, hr_ref, ag_ref, ap_ref,
                         gray_sr_ref, gray_hr_ref, sq_ref, l1_ref,
                         *, total_rows, rows_per_tile):
    """Grid = (B, num_row_tiles); both axes are fully parallel (no cross-step state).

    sr_ref/hr_ref : (3, tR, 128)   image tile, channel-major, lane-dense
    ag_ref/ap_ref : (RA, 128)      this batch element's attention maps (tiny)
    gray_*_ref    : (tR, 128)      grayscale output tile
    sq_ref        : (1, 128)       per-(batch, row-tile) lane partial of sum((sr-hr)^2)
    l1_ref        : (1, 128)       per-(batch, row-tile) lane partial of sum(|ag-ap|)
                                   (non-zero only at the first row tile of each batch element)
    """
    r = pl.program_id(1)

    sr = sr_ref[...]                      # (3, tR, 128), native dtype
    hr = hr_ref[...]

    # to_gray_tensor: 0.299 R + 0.587 G + 0.114 B  (lane-dense, unmasked stores)
    gray_sr_ref[...] = (0.299 * sr[0] + 0.587 * sr[1] + 0.114 * sr[2]).astype(gray_sr_ref.dtype)
    gray_hr_ref[...] = (0.299 * hr[0] + 0.587 * hr[1] + 0.114 * hr[2]).astype(gray_hr_ref.dtype)

    # MSE numerator partial for this tile (f32 accumulation).
    d = sr.astype(jnp.float32) - hr.astype(jnp.float32)
    sq = d[0] * d[0] + d[1] * d[1] + d[2] * d[2]          # (tR, 128)

    # Mask out-of-bounds rows of the (possibly padded) last tile.  Static Python branch:
    # compiled only when the row count does not divide evenly.
    if total_rows % rows_per_tile != 0:
        row_ids = jax.lax.broadcasted_iota(jnp.int32, sq.shape, 0)
        valid = (r * rows_per_tile + row_ids) < total_rows
        sq = jnp.where(valid, sq, 0.0)

    # Sublane reduce (XLU) straight into the per-tile output -> no VMEM accumulator scratch.
    sq_ref[...] = jnp.sum(sq, axis=0, keepdims=True)       # (1, 128)

    # Attention L1 partial: computed once per batch element (at its first row tile).
    @pl.when(r == 0)
    def _():
        ad = jnp.abs(ag_ref[...].astype(jnp.float32) - ap_ref[...].astype(jnp.float32))
        l1_ref[...] = jnp.sum(ad, axis=0, keepdims=True)   # (1, 128)

    @pl.when(r != 0)
    def _():
        l1_ref[...] = jnp.zeros_like(l1_ref)


def stroke_focus_loss(sr_img, hr_img, attn_gt, attn_pred, *, max_rows_per_tile=1024):
    """sr_img/hr_img: (B, 3, H, W) NCHW.  attn_*: (B, T, N) word-attention maps.

    Returns (loss_scalar, gray_sr (B,1,H,W), gray_hr (B,1,H,W)).

    max_rows_per_tile: lane-dense rows (of 128 elements) per grid step.  1024 is the v5e
    sweet spot and near-optimal on v6e; use 2048 on v7x/v6e for a few extra percent.
    """
    B, C, H, W = sr_img.shape
    assert C == 3, "to_gray_tensor expects 3 input channels"
    Bt, T, N = attn_gt.shape
    assert Bt == B and attn_pred.shape == attn_gt.shape
    assert (H * W) % 128 == 0, "H*W must be a multiple of 128 (lane-dense layout)"
    assert (T * N) % 128 == 0, "T*N must be a multiple of 128 (lane-dense layout)"

    R = (H * W) // 128           # lane-dense rows per (batch, channel) plane
    RA = (T * N) // 128          # lane-dense rows per batch attention map

    if R <= max_rows_per_tile:
        tR = R                   # single tile per batch element
    else:
        tR = max(8, (max_rows_per_tile // 8) * 8)   # 8-aligned target tile; last tile masked
    NR = pl.cdiv(R, tR)

    # Pure reshapes (contiguous NCHW -> lane-dense), no transpose, no extra HBM traffic.
    sr = sr_img.reshape(B, 3, R, 128)
    hr = hr_img.reshape(B, 3, R, 128)
    ag = attn_gt.reshape(B, RA, 128)
    ap = attn_pred.reshape(B, RA, 128)

    out_shapes = (
        jax.ShapeDtypeStruct((B, R, 128), sr_img.dtype),        # gray sr (lane-dense)
        jax.ShapeDtypeStruct((B, R, 128), hr_img.dtype),        # gray hr (lane-dense)
        jax.ShapeDtypeStruct((B, NR, 1, 128), jnp.float32),     # per-(b, r) sq lane partials
        jax.ShapeDtypeStruct((B, NR, 1, 128), jnp.float32),     # per-(b, r) l1 lane partials
    )

    grid_spec = pltpu.PrefetchScalarGridSpec(
        num_scalar_prefetch=0,
        grid=(B, NR),
        in_specs=[
            pl.BlockSpec((None, 3, tR, 128), lambda b, r: (b, 0, r, 0)),   # sr tile
            pl.BlockSpec((None, 3, tR, 128), lambda b, r: (b, 0, r, 0)),   # hr tile
            pl.BlockSpec((None, RA, 128), lambda b, r: (b, 0, 0)),         # attn gt (per batch)
            pl.BlockSpec((None, RA, 128), lambda b, r: (b, 0, 0)),         # attn pred (per batch)
        ],
        out_specs=[
            pl.BlockSpec((None, tR, 128), lambda b, r: (b, r, 0)),         # gray sr tile
            pl.BlockSpec((None, tR, 128), lambda b, r: (b, r, 0)),         # gray hr tile
            pl.BlockSpec((None, None, 1, 128), lambda b, r: (b, r, 0, 0)), # sq partial
            pl.BlockSpec((None, None, 1, 128), lambda b, r: (b, r, 0, 0)), # l1 partial
        ],
    )

    kernel = functools.partial(_stroke_focus_kernel, total_rows=R, rows_per_tile=tR)

    gray_sr, gray_hr, sq_part, l1_part = pl.pallas_call(
        kernel,
        out_shape=out_shapes,
        grid_spec=grid_spec,
        compiler_params=pltpu.CompilerParams(
            # No cross-step state (no resident outputs, no scratch accumulators), so both
            # axes can be parallel -> uses both TensorCores on v7x even for B == 1.
            dimension_semantics=("parallel", "parallel"),
            vmem_limit_bytes=32 * 1024 * 1024,
        ),
    )(sr, hr, ag, ap)

    # Tiny scalar glue in the wrapper: global means + weighted combine.
    mse = jnp.sum(sq_part) / jnp.float32(B * 3 * H * W)
    attention_loss = jnp.sum(l1_part) / jnp.float32(B * T * N)
    loss = 0.8 * mse + 75.0 * attention_loss

    gray_sr = gray_sr.reshape(B, 1, H, W)
    gray_hr = gray_hr.reshape(B, 1, H, W)
    return loss, gray_sr, gray_hr


if __name__ == "__main__":
    key = jax.random.PRNGKey(0)
    k1, k2, k3, k4 = jax.random.split(key, 4)

    B, C, H, W = 2, 3, 48, 64     # H*W = 3072 -> R = 24 lane-dense rows per channel plane
    T, N = 8, 64                  # T*N = 512  -> RA = 4 lane-dense rows per attention map

    sr_img = jax.random.uniform(k1, (B, C, H, W), dtype=jnp.float32)
    hr_img = jax.random.uniform(k2, (B, C, H, W), dtype=jnp.float32)
    attn_gt = jax.nn.softmax(jax.random.normal(k3, (B, T, N), dtype=jnp.float32), axis=-1)
    attn_pred = jax.nn.softmax(jax.random.normal(k4, (B, T, N), dtype=jnp.float32), axis=-1)

    # pure-JAX reference
    mse_ref = jnp.mean((sr_img - hr_img) ** 2)
    l1_ref = jnp.mean(jnp.abs(attn_gt - attn_pred))
    loss_ref = 0.8 * mse_ref + 75.0 * l1_ref
    gray_sr_ref = 0.299 * sr_img[:, 0:1] + 0.587 * sr_img[:, 1:2] + 0.114 * sr_img[:, 2:3]
    gray_hr_ref = 0.299 * hr_img[:, 0:1] + 0.587 * hr_img[:, 1:2] + 0.114 * hr_img[:, 2:3]

    # (1) default tiling: single row tile per batch element (tR == R == 24, grid (2, 1))
    fn_big = jax.jit(stroke_focus_loss)
    loss, gray_sr, gray_hr = fn_big(sr_img, hr_img, attn_gt, attn_pred)
    jax.block_until_ready((loss, gray_sr, gray_hr))
    assert jnp.allclose(loss, loss_ref, rtol=1e-5, atol=1e-5), (loss, loss_ref)
    assert jnp.allclose(gray_sr, gray_sr_ref, rtol=1e-5, atol=1e-5)
    assert jnp.allclose(gray_hr, gray_hr_ref, rtol=1e-5, atol=1e-5)

    # (2) small row tile: exercises the multi-tile + masked-last-tile path
    #     (R = 24, tR = 16, NR = 2, last tile half out of bounds; grid (2, 2))
    fn_small = jax.jit(functools.partial(stroke_focus_loss, max_rows_per_tile=16))
    loss2, gray_sr2, gray_hr2 = fn_small(sr_img, hr_img, attn_gt, attn_pred)
    jax.block_until_ready((loss2, gray_sr2, gray_hr2))
    assert jnp.allclose(loss2, loss_ref, rtol=1e-5, atol=1e-5), (loss2, loss_ref)
    assert jnp.allclose(gray_sr2, gray_sr_ref, rtol=1e-5, atol=1e-5)
    assert jnp.allclose(gray_hr2, gray_hr_ref, rtol=1e-5, atol=1e-5)

    print("KERNEL_OK")
</pallas_src>

<mosaic_0001>
module attributes {stable_mosaic.version = 11 : i64} {
  func.func @_stroke_focus_kernel(%arg0: i32, %arg1: i32, %arg2: memref<1x3x24x128xf32, #tpu.memory_space<vmem>>, %arg3: memref<1x3x24x128xf32, #tpu.memory_space<vmem>>, %arg4: memref<1x4x128xf32, #tpu.memory_space<vmem>>, %arg5: memref<1x4x128xf32, #tpu.memory_space<vmem>>, %arg6: memref<1x24x128xf32, #tpu.memory_space<vmem>>, %arg7: memref<1x24x128xf32, #tpu.memory_space<vmem>>, %arg8: memref<1x1x1x128xf32, #tpu.memory_space<vmem>>, %arg9: memref<1x1x1x128xf32, #tpu.memory_space<vmem>>) attributes {dimension_semantics = [#tpu.dimension_semantics<parallel>, #tpu.dimension_semantics<parallel>], iteration_bounds = array<i64: 2, 1>, scalar_prefetch = 0 : i64, scratch_operands = 0 : i64, tpu.core_type = #tpu.core_type<tc>, window_params = [{transform_indices = @transform_0, window_bounds = array<i64: 1, 3, 24, 128>}, {transform_indices = @transform_1, window_bounds = array<i64: 1, 3, 24, 128>}, {transform_indices = @transform_2, window_bounds = array<i64: 1, 4, 128>}, {transform_indices = @transform_3, window_bounds = array<i64: 1, 4, 128>}, {transform_indices = @transform_4, window_bounds = array<i64: 1, 24, 128>}, {transform_indices = @transform_5, window_bounds = array<i64: 1, 24, 128>}, {transform_indices = @transform_6, window_bounds = array<i64: 1, 1, 1, 128>}, {transform_indices = @transform_7, window_bounds = array<i64: 1, 1, 1, 128>}]} {
    %c0 = arith.constant 0 : index
    %c0_0 = arith.constant 0 : index
    %c0_1 = arith.constant 0 : index
    %c0_2 = arith.constant 0 : index
    %0 = vector.load %arg2[%c0, %c0_0, %c0_1, %c0_2] : memref<1x3x24x128xf32, #tpu.memory_space<vmem>>, vector<1x3x24x128xf32>
    %1 = vector.shape_cast %0 : vector<1x3x24x128xf32> to vector<3x24x128xf32>
    %c0_3 = arith.constant 0 : index
    %c0_4 = arith.constant 0 : index
    %c0_5 = arith.constant 0 : index
    %c0_6 = arith.constant 0 : index
    %2 = vector.load %arg3[%c0_3, %c0_4, %c0_5, %c0_6] : memref<1x3x24x128xf32, #tpu.memory_space<vmem>>, vector<1x3x24x128xf32>
    %3 = vector.shape_cast %2 : vector<1x3x24x128xf32> to vector<3x24x128xf32>
    %4 = vector.extract_strided_slice %1 {offsets = [0, 0, 0], sizes = [1, 24, 128], strides = [1, 1, 1]} : vector<3x24x128xf32> to vector<1x24x128xf32>
    %5 = vector.shape_cast %4 : vector<1x24x128xf32> to vector<24x128xf32>
    %cst = arith.constant 2.990000e-01 : f32
    %6 = vector.broadcast %cst : f32 to vector<24x128xf32>
    %7 = arith.mulf %6, %5 : vector<24x128xf32>
    %8 = vector.extract_strided_slice %1 {offsets = [1, 0, 0], sizes = [1, 24, 128], strides = [1, 1, 1]} : vector<3x24x128xf32> to vector<1x24x128xf32>
    %9 = vector.shape_cast %8 : vector<1x24x128xf32> to vector<24x128xf32>
    %cst_7 = arith.constant 5.870000e-01 : f32
    %10 = vector.broadcast %cst_7 : f32 to vector<24x128xf32>
    %11 = arith.mulf %10, %9 : vector<24x128xf32>
    %12 = arith.addf %7, %11 : vector<24x128xf32>
    %13 = vector.extract_strided_slice %1 {offsets = [2, 0, 0], sizes = [1, 24, 128], strides = [1, 1, 1]} : vector<3x24x128xf32> to vector<1x24x128xf32>
    %14 = vector.shape_cast %13 : vector<1x24x128xf32> to vector<24x128xf32>
    %cst_8 = arith.constant 1.140000e-01 : f32
    %15 = vector.broadcast %cst_8 : f32 to vector<24x128xf32>
    %16 = arith.mulf %15, %14 : vector<24x128xf32>
    %17 = arith.addf %12, %16 : vector<24x128xf32>
    %c0_9 = arith.constant 0 : index
    %c0_10 = arith.constant 0 : index
    %c0_11 = arith.constant 0 : index
    %18 = vector.load %arg6[%c0_9, %c0_10, %c0_11] : memref<1x24x128xf32, #tpu.memory_space<vmem>>, vector<1x24x128xf32>
    %19 = vector.shape_cast %18 : vector<1x24x128xf32> to vector<24x128xf32>
    %20 = vector.shape_cast %17 : vector<24x128xf32> to vector<1x24x128xf32>
    tpu.vector_store %arg6[%c0_9, %c0_10, %c0_11], %20 {strides = array<i32>} : memref<1x24x128xf32, #tpu.memory_space<vmem>>, vector<1x24x128xf32>,
    %21 = vector.extract_strided_slice %3 {offsets = [0, 0, 0], sizes = [1, 24, 128], strides = [1, 1, 1]} : vector<3x24x128xf32> to vector<1x24x128xf32>
    %22 = vector.shape_cast %21 : vector<1x24x128xf32> to vector<24x128xf32>
    %cst_12 = arith.constant 2.990000e-01 : f32
    %23 = vector.broadcast %cst_12 : f32 to vector<24x128xf32>
    %24 = arith.mulf %23, %22 : vector<24x128xf32>
    %25 = vector.extract_strided_slice %3 {offsets = [1, 0, 0], sizes = [1, 24, 128], strides = [1, 1, 1]} : vector<3x24x128xf32> to vector<1x24x128xf32>
    %26 = vector.shape_cast %25 : vector<1x24x128xf32> to vector<24x128xf32>
    %cst_13 = arith.constant 5.870000e-01 : f32
    %27 = vector.broadcast %cst_13 : f32 to vector<24x128xf32>
    %28 = arith.mulf %27, %26 : vector<24x128xf32>
    %29 = arith.addf %24, %28 : vector<24x128xf32>
    %30 = vector.extract_strided_slice %3 {offsets = [2, 0, 0], sizes = [1, 24, 128], strides = [1, 1, 1]} : vector<3x24x128xf32> to vector<1x24x128xf32>
    %31 = vector.shape_cast %30 : vector<1x24x128xf32> to vector<24x128xf32>
    %cst_14 = arith.constant 1.140000e-01 : f32
    %32 = vector.broadcast %cst_14 : f32 to vector<24x128xf32>
    %33 = arith.mulf %32, %31 : vector<24x128xf32>
    %34 = arith.addf %29, %33 : vector<24x128xf32>
    %c0_15 = arith.constant 0 : index
    %c0_16 = arith.constant 0 : index
    %c0_17 = arith.constant 0 : index
    %35 = vector.load %arg7[%c0_15, %c0_16, %c0_17] : memref<1x24x128xf32, #tpu.memory_space<vmem>>, vector<1x24x128xf32>
    %36 = vector.shape_cast %35 : vector<1x24x128xf32> to vector<24x128xf32>
    %37 = vector.shape_cast %34 : vector<24x128xf32> to vector<1x24x128xf32>
    tpu.vector_store %arg7[%c0_15, %c0_16, %c0_17], %37 {strides = array<i32>} : memref<1x24x128xf32, #tpu.memory_space<vmem>>, vector<1x24x128xf32>,
    %38 = arith.subf %1, %3 : vector<3x24x128xf32>
    %39 = vector.extract_strided_slice %38 {offsets = [0, 0, 0], sizes = [1, 24, 128], strides = [1, 1, 1]} : vector<3x24x128xf32> to vector<1x24x128xf32>
    %40 = vector.shape_cast %39 : vector<1x24x128xf32> to vector<24x128xf32>
    %41 = vector.extract_strided_slice %38 {offsets = [0, 0, 0], sizes = [1, 24, 128], strides = [1, 1, 1]} : vector<3x24x128xf32> to vector<1x24x128xf32>
    %42 = vector.shape_cast %41 : vector<1x24x128xf32> to vector<24x128xf32>
    %43 = arith.mulf %40, %42 : vector<24x128xf32>
    %44 = vector.extract_strided_slice %38 {offsets = [1, 0, 0], sizes = [1, 24, 128], strides = [1, 1, 1]} : vector<3x24x128xf32> to vector<1x24x128xf32>
    %45 = vector.shape_cast %44 : vector<1x24x128xf32> to vector<24x128xf32>
    %46 = vector.extract_strided_slice %38 {offsets = [1, 0, 0], sizes = [1, 24, 128], strides = [1, 1, 1]} : vector<3x24x128xf32> to vector<1x24x128xf32>
    %47 = vector.shape_cast %46 : vector<1x24x128xf32> to vector<24x128xf32>
    %48 = arith.mulf %45, %47 : vector<24x128xf32>
    %49 = arith.addf %43, %48 : vector<24x128xf32>
    %50 = vector.extract_strided_slice %38 {offsets = [2, 0, 0], sizes = [1, 24, 128], strides = [1, 1, 1]} : vector<3x24x128xf32> to vector<1x24x128xf32>
    %51 = vector.shape_cast %50 : vector<1x24x128xf32> to vector<24x128xf32>
    %52 = vector.extract_strided_slice %38 {offsets = [2, 0, 0], sizes = [1, 24, 128], strides = [1, 1, 1]} : vector<3x24x128xf32> to vector<1x24x128xf32>
    %53 = vector.shape_cast %52 : vector<1x24x128xf32> to vector<24x128xf32>
    %54 = arith.mulf %51, %53 : vector<24x128xf32>
    %55 = arith.addf %49, %54 : vector<24x128xf32>
    %cst_18 = arith.constant dense<0.000000e+00> : vector<128xf32>
    %56 = vector.multi_reduction <add>, %55, %cst_18 [0] : vector<24x128xf32> to vector<128xf32>
    %57 = vector.shape_cast %56 : vector<128xf32> to vector<1x128xf32>
    %c0_19 = arith.constant 0 : index
    %c0_20 = arith.constant 0 : index
    %c0_21 = arith.constant 0 : index
    %c0_22 = arith.constant 0 : index
    %58 = vector.load %arg8[%c0_19, %c0_20, %c0_21, %c0_22] : memref<1x1x1x128xf32, #tpu.memory_space<vmem>>, vector<1x1x1x128xf32>
    %59 = vector.shape_cast %58 : vector<1x1x1x128xf32> to vector<1x128xf32>
    %60 = vector.shape_cast %57 : vector<1x128xf32> to vector<1x1x1x128xf32>
    tpu.vector_store %arg8[%c0_19, %c0_20, %c0_21, %c0_22], %60 {strides = array<i32>} : memref<1x1x1x128xf32, #tpu.memory_space<vmem>>, vector<1x1x1x128xf32>,
    %c0_i32 = arith.constant 0 : i32
    %61 = arith.cmpi eq, %arg1, %c0_i32 : i32
    %62 = arith.extui %61 : i1 to i32
    %c0_i32_23 = arith.constant 0 : i32
    %63 = arith.cmpi ne, %62, %c0_i32_23 : i32
    scf.if %63 {
      %c0_26 = arith.constant 0 : index
      %c0_27 = arith.constant 0 : index
      %c0_28 = arith.constant 0 : index
      %67 = vector.load %arg4[%c0_26, %c0_27, %c0_28] : memref<1x4x128xf32, #tpu.memory_space<vmem>>, vector<1x4x128xf32>
      %68 = vector.shape_cast %67 : vector<1x4x128xf32> to vector<4x128xf32>
      %c0_29 = arith.constant 0 : index
      %c0_30 = arith.constant 0 : index
      %c0_31 = arith.constant 0 : index
      %69 = vector.load %arg5[%c0_29, %c0_30, %c0_31] : memref<1x4x128xf32, #tpu.memory_space<vmem>>, vector<1x4x128xf32>
      %70 = vector.shape_cast %69 : vector<1x4x128xf32> to vector<4x128xf32>
      %71 = arith.subf %68, %70 : vector<4x128xf32>
      %72 = math.absf %71 : vector<4x128xf32>
      %cst_32 = arith.constant dense<0.000000e+00> : vector<128xf32>
      %73 = vector.multi_reduction <add>, %72, %cst_32 [0] : vector<4x128xf32> to vector<128xf32>
      %74 = vector.shape_cast %73 : vector<128xf32> to vector<1x128xf32>
      %c0_33 = arith.constant 0 : index
      %c0_34 = arith.constant 0 : index
      %c0_35 = arith.constant 0 : index
      %c0_36 = arith.constant 0 : index
      %75 = vector.load %arg9[%c0_33, %c0_34, %c0_35, %c0_36] : memref<1x1x1x128xf32, #tpu.memory_space<vmem>>, vector<1x1x1x128xf32>
      %76 = vector.shape_cast %75 : vector<1x1x1x128xf32> to vector<1x128xf32>
      %77 = vector.shape_cast %74 : vector<1x128xf32> to vector<1x1x1x128xf32>
      tpu.vector_store %arg9[%c0_33, %c0_34, %c0_35, %c0_36], %77 {strides = array<i32>} : memref<1x1x1x128xf32, #tpu.memory_space<vmem>>, vector<1x1x1x128xf32>,
    } else {
    }
    %c0_i32_24 = arith.constant 0 : i32
    %64 = arith.cmpi ne, %arg1, %c0_i32_24 : i32
    %65 = arith.extui %64 : i1 to i32
    %c0_i32_25 = arith.constant 0 : i32
    %66 = arith.cmpi ne, %65, %c0_i32_25 : i32
    scf.if %66 {
      %cst_26 = arith.constant 0.000000e+00 : f32
      %67 = vector.broadcast %cst_26 : f32 to vector<1x128xf32>
      %c0_27 = arith.constant 0 : index
      %c0_28 = arith.constant 0 : index
      %c0_29 = arith.constant 0 : index
      %c0_30 = arith.constant 0 : index
      %68 = vector.load %arg9[%c0_27, %c0_28, %c0_29, %c0_30] : memref<1x1x1x128xf32, #tpu.memory_space<vmem>>, vector<1x1x1x128xf32>
      %69 = vector.shape_cast %68 : vector<1x1x1x128xf32> to vector<1x128xf32>
      %70 = vector.shape_cast %67 : vector<1x128xf32> to vector<1x1x1x128xf32>
      tpu.vector_store %arg9[%c0_27, %c0_28, %c0_29, %c0_30], %70 {strides = array<i32>} : memref<1x1x1x128xf32, #tpu.memory_space<vmem>>, vector<1x1x1x128xf32>,
    } else {
    }
    return
  }
  func.func @transform_0(%arg0: i32, %arg1: i32) -> (i32, i32, i32, i32) {
    %c0_i32 = arith.constant 0 : i32
    %c0_i32_0 = arith.constant 0 : i32
    %c0_i32_1 = arith.constant 0 : i32
    return %arg0, %c0_i32, %arg1, %c0_i32_0 : i32, i32, i32, i32
  }
  func.func @transform_1(%arg0: i32, %arg1: i32) -> (i32, i32, i32, i32) {
    %c0_i32 = arith.constant 0 : i32
    %c0_i32_0 = arith.constant 0 : i32
    %c0_i32_1 = arith.constant 0 : i32
    return %arg0, %c0_i32, %arg1, %c0_i32_0 : i32, i32, i32, i32
  }
  func.func @transform_2(%arg0: i32, %arg1: i32) -> (i32, i32, i32) {
    %c0_i32 = arith.constant 0 : i32
    %c0_i32_0 = arith.constant 0 : i32
    %c0_i32_1 = arith.constant 0 : i32
    return %arg0, %c0_i32, %c0_i32_0 : i32, i32, i32
  }
  func.func @transform_3(%arg0: i32, %arg1: i32) -> (i32, i32, i32) {
    %c0_i32 = arith.constant 0 : i32
    %c0_i32_0 = arith.constant 0 : i32
    %c0_i32_1 = arith.constant 0 : i32
    return %arg0, %c0_i32, %c0_i32_0 : i32, i32, i32
  }
  func.func @transform_4(%arg0: i32, %arg1: i32) -> (i32, i32, i32) {
    %c0_i32 = arith.constant 0 : i32
    %c0_i32_0 = arith.constant 0 : i32
    return %arg0, %arg1, %c0_i32 : i32, i32, i32
  }
  func.func @transform_5(%arg0: i32, %arg1: i32) -> (i32, i32, i32) {
    %c0_i32 = arith.constant 0 : i32
    %c0_i32_0 = arith.constant 0 : i32
    return %arg0, %arg1, %c0_i32 : i32, i32, i32
  }
  func.func @transform_6(%arg0: i32, %arg1: i32) -> (i32, i32, i32, i32) {
    %c0_i32 = arith.constant 0 : i32
    %c0_i32_0 = arith.constant 0 : i32
    %c0_i32_1 = arith.constant 0 : i32
    return %arg0, %arg1, %c0_i32, %c0_i32_0 : i32, i32, i32, i32
  }
  func.func @transform_7(%arg0: i32, %arg1: i32) -> (i32, i32, i32, i32) {
    %c0_i32 = arith.constant 0 : i32
    %c0_i32_0 = arith.constant 0 : i32
    %c0_i32_1 = arith.constant 0 : i32
    return %arg0, %arg1, %c0_i32, %c0_i32_0 : i32, i32, i32, i32
  }
}

</mosaic_0001>

<bundles_post_ra>
// kernel: stroke_focus_loss.1
= control target key start
LH: loop header
LB: loop body
LE: loop exit
PB: predicated region body
PF: predicated region fallthrough
CT: control target
= control target key end

     0   :  { %s905_s24 = smov 0   ;;  %s907_s25 = smov 0   ;;  %s988_s0 = inlined_call_operand.vmem [shape: f32[2,3,24,128], index: 0, kind: input, shape index: {}]   ;;  %s989_s1 = inlined_call_operand.vmem [shape: f32[2,3,24,128], index: 1, kind: input, shape index: {}]   ;;  %s990_s2 = inlined_call_operand.vmem [shape: f32[2,4,128], index: 2, kind: input, shape index: {}]   ;;  %s991_s3 = inlined_call_operand.vmem [shape: f32[2,4,128], index: 3, kind: input, shape index: {}]   ;;  %s992_s4 = inlined_call_operand.vmem [shape: f32[2,24,128], index: 4, kind: output, shape index: {0}]   ;;  %s993_s5 = inlined_call_operand.vmem [shape: f32[2,24,128], index: 5, kind: output, shape index: {1}]   ;;  %s994_s6 = inlined_call_operand.vmem [shape: f32[2,1,1,128], index: 6, kind: output, shape index: {2}]   ;;  %s995_s7 = inlined_call_operand.vmem [shape: f32[2,1,1,128], index: 7, kind: output, shape index: {3}]  }
   0x1   :  { %s909_s26 = smov 0  }
   0x2 LB: > { %s30_s27 = sadd.s32 1, %s859_s25  ;;  %p806_p0 = scmp.ge.s32.totalorder %s863_s26, 1  ;;  %s863_s26 = sphi %s909_s26, %s18_s26   ;;  %s859_s25 = sphi %s907_s25, %s997_s25   ;;  %s855_s24 = sphi %s905_s24, %s996_s24  }
   0x3   : > { %p32_p1 = scmp.ge.s32.totalorder %s30_s27, 2  ;;  %p306_p2 = scmp.lt.s32.totalorder %s863_s26, 3 }
   0x5   : > { %s999_s27 = smov (%p32_p1, %s30_s27), 0  ;;  %p307_p3 = pnand %p806_p0, %p306_p2 }
   0x6   : > { %p385_p4 = scmp.lt.s32.totalorder (!%p307_p3), %s855_s24, 1 }
   0x7   : > { %310 = sbr.rel (%p307_p3) target bundleno = 53 (0x35), region = 36 }
   0xc   : > { %s1001_s24 = smov (!%p385_p4, %s855_s24), 1  ;;  %vm539_vm0 = vcmask 1043456  }
   0xd   : > { %s815_s28 = smul.u32 72, %s1001_s24  ;;  %s809_s16 = sshll.u32 %s1001_s24, 2 }
   0xe   : > { %s816_s9 = smul.u32 24, %s1001_s24  ;;  %s407_s19 = scalar_lea.vmem %s990_s2, %s809_s16 }
   0xf   : > { %s392_s8 = scalar_lea.vmem %s988_s0, %s815_s28  ;;  %s933_s12 = scalar_lea.vmem %s989_s1, %s815_s28  ;;  %v535_v57 = vld [vmem:[%s407_s19] sm:$0xf] }
  0x10   : > { %v444_v0 = vld [vmem:[%s392_s8] sm:$0xff]  ;;  %v447_v1 = vld [vmem:[%s392_s8 + $0x18] sm:$0xff]  ;;  %v450_v2 = vld [vmem:[%s392_s8 + $0x30] sm:$0xff]  ;;  %s940_s15 = scalar_lea.vmem %s992_s4, %s816_s9  ;;  %s411_s22 = scalar_lea.vmem %s991_s3, %s809_s16 }
  0x11   : > { %v462_v3 = vmul.f32 0.299, %v444_v0  ;;  %v465_v4 = vmul.f32 0.587, %v447_v1  ;;  %v471_v5 = vmul.f32 0.114, %v450_v2  ;;  %s962_s29 = scalar_lea.vmem %s993_s5, %s816_s9  ;;  %s443_s9 = scalar_lea.vmem %s995_s7, %s1001_s24 }
  0x12   : > { %v445_v6 = vld [vmem:[%s392_s8 + $0x8] sm:$0xff]  ;;  %v448_v7 = vld [vmem:[%s392_s8 + $0x20] sm:$0xff]  ;;  %v451_v8 = vld [vmem:[%s392_s8 + $0x38] sm:$0xff] }
  0x13   : > { %v468_v9 = vadd.f32 %v465_v4, %v462_v3  ;;  %v463_v10 = vmul.f32 0.299, %v445_v6  ;;  %v466_v11 = vmul.f32 0.587, %v448_v7  ;;  %v472_v12 = vmul.f32 0.114, %v451_v8 }
  0x14   : > { %v446_v13 = vld [vmem:[%s392_s8 + $0x10] sm:$0xff]  ;;  %v449_v14 = vld [vmem:[%s392_s8 + $0x28] sm:$0xff]  ;;  %v452_v15 = vld [vmem:[%s392_s8 + $0x40] sm:$0xff] }
  0x15   : > { %v474_v16 = vadd.f32 %v471_v5, %v468_v9  ;;  %v469_v17 = vadd.f32 %v466_v11, %v463_v10  ;;  %v464_v18 = vmul.f32 0.299, %v446_v13  ;;  %v467_v19 = vmul.f32 0.587, %v449_v14  ;;  %v453_v20 = vld [vmem:[%s933_s12] sm:$0xff]  ;;  %v456_v21 = vld [vmem:[%s933_s12 + $0x18] sm:$0xff] }
  0x16   : > { %v473_v22 = vmul.f32 0.114, %v452_v15  ;;  %v459_v23 = vld [vmem:[%s933_s12 + $0x30] sm:$0xff]  ;;  %v480_v24 = vmul.f32 0.299, %v453_v20  ;;  %v498_v25 = vsub.f32 %v444_v0, %v453_v20  ;;  %v501_v26 = vsub.f32 %v447_v1, %v456_v21  ;;  %v454_v31 = vld [vmem:[%s933_s12 + $0x8] sm:$0xff] }
  0x17   : > { %477 = vst [vmem:[%s940_s15] sm:$0xff] %v474_v16  ;;  %v475_v27 = vadd.f32 %v472_v12, %v469_v17  ;;  %v470_v28 = vadd.f32 %v467_v19, %v464_v18  ;;  %v483_v29 = vmul.f32 0.587, %v456_v21  ;;  %v489_v30 = vmul.f32 0.114, %v459_v23  ;;  %v457_v32 = vld [vmem:[%s933_s12 + $0x20] sm:$0xff]  ;;  %v460_v36 = vld [vmem:[%s933_s12 + $0x38] sm:$0xff] }
  0x18   : > { %v504_v33 = vsub.f32 %v450_v2, %v459_v23  ;;  %v507_v34 = vmul.f32 %v498_v25, %v498_v25  ;;  %v510_v35 = vmul.f32 %v501_v26, %v501_v26  ;;  %v481_v37 = vmul.f32 0.299, %v454_v31  ;;  %v455_v46 = vld [vmem:[%s933_s12 + $0x10] sm:$0xff]  ;;  %v458_v50 = vld [vmem:[%s933_s12 + $0x28] sm:$0xff]  ;;  %v461_v51 = vld [vmem:[%s933_s12 + $0x40] sm:$0xff]  ;;  %s437_s12 = scalar_lea.vmem %s994_s6, %s1001_s24 }
  0x19   : > { %478 = vst [vmem:[%s940_s15 + $0x8] sm:$0xff] %v475_v27  ;;  %v476_v38 = vadd.f32 %v473_v22, %v470_v28  ;;  %v486_v39 = vadd.f32 %v483_v29, %v480_v24  ;;  %v484_v40 = vmul.f32 0.587, %v457_v32  ;;  %v490_v41 = vmul.f32 0.114, %v460_v36 }
  0x1a   : > { %v513_v42 = vadd.f32 %v510_v35, %v507_v34  ;;  %v516_v43 = vmul.f32 %v504_v33, %v504_v33  ;;  %v499_v44 = vsub.f32 %v445_v6, %v454_v31  ;;  %v502_v45 = vsub.f32 %v448_v7, %v457_v32  ;;  %v536_v58 = vld [vmem:[%s411_s22] sm:$0xf] }
  0x1b   : > { %479 = vst [vmem:[%s940_s15 + $0x10] sm:$0xff] %v476_v38  ;;  %v492_v47 = vadd.f32 %v489_v30, %v486_v39  ;;  %v487_v48 = vadd.f32 %v484_v40, %v481_v37  ;;  %v505_v49 = vsub.f32 %v451_v8, %v460_v36  ;;  %v482_v52 = vmul.f32 0.299, %v455_v46 }
  0x1c   : > { %v519_v53 = vadd.f32 %v516_v43, %v513_v42  ;;  %v508_v54 = vmul.f32 %v499_v44, %v499_v44  ;;  %v511_v55 = vmul.f32 %v502_v45, %v502_v45  ;;  %v485_v56 = vmul.f32 0.587, %v458_v50 }
  0x1d   : > { %495 = vst [vmem:[%s962_s29] sm:$0xff] %v492_v47  ;;  %v493_v59 = vadd.f32 %v490_v41, %v487_v48  ;;  %v517_v60 = vmul.f32 %v505_v49, %v505_v49  ;;  %v491_v61 = vmul.f32 0.114, %v461_v51  ;;  %v500_v62 = vsub.f32 %v446_v13, %v455_v46 }
  0x1e   : > { %v514_v63 = vadd.f32 %v511_v55, %v508_v54  ;;  %v488_v0 = vadd.f32 %v485_v56, %v482_v52  ;;  %v503_v1 = vsub.f32 %v449_v14, %v458_v50  ;;  %v506_v2 = vsub.f32 %v452_v15, %v461_v51 }
  0x1f   : > { %496 = vst [vmem:[%s962_s29 + $0x8] sm:$0xff] %v493_v59  ;;  %v509_v3 = vmul.f32 %v500_v62, %v500_v62  ;;  %v537_v4 = vsub.f32 %v535_v57, %v536_v58 }
  0x20   : > { %v520_v5 = vadd.f32 %v517_v60, %v514_v63  ;;  %v494_v6 = vadd.f32 %v491_v61, %v488_v0  ;;  %v512_v7 = vmul.f32 %v503_v1, %v503_v1  ;;  %v518_v8 = vmul.f32 %v506_v2, %v506_v2 }
  0x21   : > { %v538_v9 = vand.u32 2147483647, %v537_v4 }
  0x22   : > { %497 = vst [vmem:[%s962_s29 + $0x10] sm:$0xff] %v494_v6  ;;  %v515_v10 = vadd.f32 %v512_v7, %v509_v3  ;;  %v522_v11 = vadd.f32 %v520_v5, %v519_v53 }
  0x23   : > { %v540_v12 = vsel %vm539_vm0, %v538_v9, 0.0 }
  0x24   : > { %v521_v13 = vadd.f32 %v518_v8, %v515_v10  ;;  %v541_v16 = vrot.slane %v540_v12, 4 }
  0x26   : > { %v523_v17 = vadd.f32 %v522_v11, %v521_v13  ;;  %v542_v14 = vadd.f32 %v541_v16, %v540_v12 }
  0x28   : > { %v524_v15 = vrot.slane %v523_v17, 4  ;;  %v543_v18 = vrot.slane %v542_v14, 2 }
  0x2a   : > { %v525_v19 = vadd.f32 %v524_v15, %v523_v17  ;;  %v544_v20 = vadd.f32 %v543_v18, %v542_v14 }
  0x2c   : > { %v526_v21 = vrot.slane %v525_v19, 2  ;;  %v545_v22 = vrot.slane %v544_v20, 1 }
  0x2e   : > { %v527_v23 = vadd.f32 %v526_v21, %v525_v19  ;;  %v546_v24 = vadd.f32 %v545_v22, %v544_v20 }
  0x30   : > { %v528_v25 = vrot.slane %v527_v23, 1  ;;  %547 = vst [vmem:[%s443_s9] sm:$0x1] %v546_v24 }
  0x32   : > { %v529_v26 = vadd.f32 %v528_v25, %v527_v23 }
  0x34   : > { %530 = vst [vmem:[%s437_s12] sm:$0x1] %v529_v26 }
  0x35 PF: > { %s18_s26 = sadd.s32 1, %s863_s26   ;;  %s996_s24 = smov %s859_s25 }
  0x36   : > { %p15_p5 = scmp.ge.s32.totalorder %s18_s26, 4   ;;  %s997_s25 = smov %s999_s27 }
  0x38   :  { %17 = sbr.rel (!%p15_p5) target bundleno = 2 (0x2), region = 119 }

</bundles_post_ra>
